<compile_context>
chip_gen: v7x
topology: tpu7x:2x2x1
jax: 0.10.0
libtpu: 0.0.40
codegen_flags: <defaults>
</compile_context>

<pallas_src>
import jax
import jax.numpy as jnp
from jax.experimental import pallas as pl
from jax.experimental.pallas import tpu as pltpu

EMBEDDING_DIM = 6
HIDDEN_DIM = 6
TAGSET_SIZE = 3


def lstm_tagger_kernel(emb_ref, wih_t_ref, whh_t_ref, b_ref,
                       wtag_t_ref, btag_ref, out_ref):
    """LSTM recurrence + hidden2tag + log_softmax, all operands VMEM-resident."""
    T = emb_ref.shape[0]
    H = whh_t_ref.shape[0]
    f32 = jnp.float32

    # ---- load everything into vregs once (a few hundred floats total) ----
    emb = emb_ref[...]          # (T, E)
    wih_t = wih_t_ref[...]      # (E, 4H)
    whh_t = whh_t_ref[...]      # (H, 4H)
    b = b_ref[...]              # (1, 4H)
    wtag_t = wtag_t_ref[...]    # (H, TAGS)
    btag = btag_ref[...]        # (1, TAGS)

    # ---- hoisted input projection: one MXU matmul for all timesteps ----
    xg = jnp.dot(emb, wih_t, preferred_element_type=f32) + b        # (T, 4H)

    # Pre-split per gate (torch order [i, f, g, o]) OUTSIDE the loop so the
    # serial recurrence never lane-slices a packed (1,4H) vector per step.
    xg_i, xg_f, xg_g, xg_o = [xg[:, k * H:(k + 1) * H] for k in range(4)]
    whh_i, whh_f, whh_g, whh_o = [whh_t[:, k * H:(k + 1) * H] for k in range(4)]

    # Identity mask used to move h from lanes to sublanes with plain VPU/XLU
    # ops (broadcast + mask + lane-reduce) — no transpose primitive, no MXU.
    rows = jax.lax.broadcasted_iota(jnp.int32, (H, H), 0)
    cols = jax.lax.broadcasted_iota(jnp.int32, (H, H), 1)
    eye_h = (rows == cols).astype(f32)                               # (H, H)

    def vpu_matvec(h_sublane_bcast, w):      # sum_k h[k] * w[k, :] -> (1, H)
        return jnp.sum(h_sublane_bcast * w, axis=0, keepdims=True)

    h = jnp.zeros((1, H), f32)               # LSTMTagger.init_hidden(): zeros
    c = jnp.zeros((1, H), f32)
    h_rows = []

    # ---- fully unrolled recurrence (T is static at trace time) ----
    for t in range(T):
        # h_sub[k, 0] = h[0, k]: lanes -> sublanes via mask + lane reduce.
        h_sub = jnp.sum(jnp.broadcast_to(h, (H, H)) * eye_h,
                        axis=1, keepdims=True)                       # (H, 1)
        hb = jnp.broadcast_to(h_sub, (H, H))                         # (H, H)

        # Recurrent matvec on the VPU (per gate, no MXU on the serial path).
        pre_i = xg_i[t:t + 1, :] + vpu_matvec(hb, whh_i)             # (1, H)
        pre_f = xg_f[t:t + 1, :] + vpu_matvec(hb, whh_f)
        pre_g = xg_g[t:t + 1, :] + vpu_matvec(hb, whh_g)
        pre_o = xg_o[t:t + 1, :] + vpu_matvec(hb, whh_o)

        # Pack the three sigmoids into one EUP pass (gate index on sublanes).
        sig = jax.nn.sigmoid(jnp.concatenate([pre_i, pre_f, pre_o], axis=0))
        i_g = sig[0:1, :]
        f_g = sig[1:2, :]
        o_g = sig[2:3, :]
        g_g = jnp.tanh(pre_g)

        c = f_g * c + i_g * g_g
        h = o_g * jnp.tanh(c)
        h_rows.append(h)

    hs = jnp.concatenate(h_rows, axis=0)                             # (T, H)

    # ---- hoisted hidden2tag + batched log_softmax, single output store ----
    logits = jnp.dot(hs, wtag_t, preferred_element_type=f32) + btag  # (T, TAGS)
    logits = logits - jnp.max(logits, axis=-1, keepdims=True)
    lse = jnp.log(jnp.sum(jnp.exp(logits), axis=-1, keepdims=True))
    out_ref[...] = logits - lse


def lstm_tagger_forward(token_ids, params):
    # Glue: embedding gather + weight transposes stay in plain JAX/XLA.
    embeds = jnp.take(params["embedding"], token_ids, axis=0).astype(jnp.float32)  # (T, E)
    T = embeds.shape[0]

    wih_t = params["w_ih"].T.astype(jnp.float32)                              # (E, 4H)
    whh_t = params["w_hh"].T.astype(jnp.float32)                              # (H, 4H)
    b = (params["b_ih"] + params["b_hh"]).reshape(1, -1).astype(jnp.float32)  # (1, 4H)
    wtag_t = params["w_tag"].T.astype(jnp.float32)                            # (H, TAGS)
    btag = params["b_tag"].reshape(1, -1).astype(jnp.float32)                 # (1, TAGS)

    operands = (embeds, wih_t, whh_t, b, wtag_t, btag)
    vmem = pltpu.MemorySpace.VMEM
    return pl.pallas_call(
        lstm_tagger_kernel,
        out_shape=jax.ShapeDtypeStruct((T, TAGSET_SIZE), jnp.float32),
        in_specs=[pl.BlockSpec(memory_space=vmem) for _ in operands],
        out_specs=pl.BlockSpec(memory_space=vmem),
    )(*operands)


def lstm_tagger_reference(token_ids, params):
    """Pure-JAX reference matching torch nn.LSTM + Linear + log_softmax."""
    emb = jnp.take(params["embedding"], token_ids, axis=0).astype(jnp.float32)
    H = HIDDEN_DIM
    w_ih, w_hh = params["w_ih"], params["w_hh"]
    b = params["b_ih"] + params["b_hh"]
    h = jnp.zeros((H,), jnp.float32)
    c = jnp.zeros((H,), jnp.float32)
    hs = []
    for t in range(emb.shape[0]):
        gates = w_ih @ emb[t] + w_hh @ h + b
        i = jax.nn.sigmoid(gates[0 * H:1 * H])
        f = jax.nn.sigmoid(gates[1 * H:2 * H])
        g = jnp.tanh(gates[2 * H:3 * H])
        o = jax.nn.sigmoid(gates[3 * H:4 * H])
        c = f * c + i * g
        h = o * jnp.tanh(c)
        hs.append(h)
    hs = jnp.stack(hs)
    logits = hs @ params["w_tag"].T + params["b_tag"]
    return jax.nn.log_softmax(logits, axis=-1)


def init_params(key, vocab_size, embedding_dim, hidden_dim, tagset_size):
    """Deterministic synthetic init (matches the shapes of the torch module)."""
    ks = jax.random.split(key, 7)
    k_lstm = 1.0 / jnp.sqrt(hidden_dim)
    k_lin = 1.0 / jnp.sqrt(hidden_dim)
    u = lambda k, shape, scale: jax.random.uniform(
        k, shape, jnp.float32, minval=-scale, maxval=scale)
    return {
        "embedding": jax.random.normal(ks[0], (vocab_size, embedding_dim), jnp.float32),
        "w_ih": u(ks[1], (4 * hidden_dim, embedding_dim), k_lstm),
        "w_hh": u(ks[2], (4 * hidden_dim, hidden_dim), k_lstm),
        "b_ih": u(ks[3], (4 * hidden_dim,), k_lstm),
        "b_hh": u(ks[4], (4 * hidden_dim,), k_lstm),
        "w_tag": u(ks[5], (tagset_size, hidden_dim), k_lin),
        "b_tag": u(ks[6], (tagset_size,), k_lin),
    }


if __name__ == "__main__":
    training_data = [
        ("The dog ate the apple".split(), ["DET", "NN", "V", "DET", "NN"]),
        ("Everybody read that book".split(), ["NN", "V", "DET", "NN"]),
    ]
    word_to_idx = {}
    for sent, _ in training_data:
        for w in sent:
            if w not in word_to_idx:
                word_to_idx[w] = len(word_to_idx)

    # prepare_sequence(training_data[0][0], word_to_idx)
    token_ids = jnp.array([word_to_idx[w] for w in training_data[0][0]], dtype=jnp.int32)

    params = init_params(jax.random.PRNGKey(0), len(word_to_idx),
                         EMBEDDING_DIM, HIDDEN_DIM, TAGSET_SIZE)

    tag_scores = lstm_tagger_forward(token_ids, params)
    jax.block_until_ready(tag_scores)

    assert tag_scores.shape == (len(token_ids), TAGSET_SIZE)
    # log_softmax rows sum (in prob space) to ~1
    assert jnp.allclose(jnp.sum(jnp.exp(tag_scores), axis=-1), 1.0, atol=1e-4)
    # numerical match against pure-JAX reference of the torch module
    ref = lstm_tagger_reference(token_ids, params)
    assert jnp.allclose(tag_scores, ref, atol=2e-5, rtol=1e-4), (tag_scores, ref)
    print("KERNEL_OK")
</pallas_src>

<mosaic_0001>
module attributes {stable_mosaic.version = 11 : i64} {
  func.func @lstm_tagger_kernel(%arg0: memref<5x6xf32, #tpu.memory_space<vmem>>, %arg1: memref<6x24xf32, #tpu.memory_space<vmem>>, %arg2: memref<6x24xf32, #tpu.memory_space<vmem>>, %arg3: memref<1x24xf32, #tpu.memory_space<vmem>>, %arg4: memref<6x3xf32, #tpu.memory_space<vmem>>, %arg5: memref<1x3xf32, #tpu.memory_space<vmem>>, %arg6: memref<5x3xf32, #tpu.memory_space<vmem>>) attributes {dimension_semantics = [], scalar_prefetch = 0 : i64, scratch_operands = 0 : i64, tpu.core_type = #tpu.core_type<tc>} {
    %c0 = arith.constant 0 : index
    %c0_0 = arith.constant 0 : index
    %0 = vector.load %arg0[%c0, %c0_0] : memref<5x6xf32, #tpu.memory_space<vmem>>, vector<5x6xf32>
    %c0_1 = arith.constant 0 : index
    %c0_2 = arith.constant 0 : index
    %1 = vector.load %arg1[%c0_1, %c0_2] : memref<6x24xf32, #tpu.memory_space<vmem>>, vector<6x24xf32>
    %c0_3 = arith.constant 0 : index
    %c0_4 = arith.constant 0 : index
    %2 = vector.load %arg2[%c0_3, %c0_4] : memref<6x24xf32, #tpu.memory_space<vmem>>, vector<6x24xf32>
    %c0_5 = arith.constant 0 : index
    %c0_6 = arith.constant 0 : index
    %3 = vector.load %arg3[%c0_5, %c0_6] : memref<1x24xf32, #tpu.memory_space<vmem>>, vector<1x24xf32>
    %c0_7 = arith.constant 0 : index
    %c0_8 = arith.constant 0 : index
    %4 = vector.load %arg4[%c0_7, %c0_8] : memref<6x3xf32, #tpu.memory_space<vmem>>, vector<6x3xf32>
    %c0_9 = arith.constant 0 : index
    %c0_10 = arith.constant 0 : index
    %5 = vector.load %arg5[%c0_9, %c0_10] : memref<1x3xf32, #tpu.memory_space<vmem>>, vector<1x3xf32>
    %cst = arith.constant dense<0.000000e+00> : vector<5x24xf32>
    %6 = tpu.matmul %0, %1, %cst {dimension_numbers = #tpu.dot_dimension_numbers<[1], [0], [0], [1], [0, 0, 1, 1], [], []>} : vector<5x6xf32>, vector<6x24xf32>, vector<5x24xf32> -> vector<5x24xf32>
    %7 = vector.broadcast %3 : vector<1x24xf32> to vector<5x24xf32>
    %8 = arith.addf %6, %7 : vector<5x24xf32>
    %9 = vector.extract_strided_slice %8 {offsets = [0, 0], sizes = [5, 6], strides = [1, 1]} : vector<5x24xf32> to vector<5x6xf32>
    %10 = vector.extract_strided_slice %8 {offsets = [0, 6], sizes = [5, 6], strides = [1, 1]} : vector<5x24xf32> to vector<5x6xf32>
    %11 = vector.extract_strided_slice %8 {offsets = [0, 12], sizes = [5, 6], strides = [1, 1]} : vector<5x24xf32> to vector<5x6xf32>
    %12 = vector.extract_strided_slice %8 {offsets = [0, 18], sizes = [5, 6], strides = [1, 1]} : vector<5x24xf32> to vector<5x6xf32>
    %13 = vector.extract_strided_slice %2 {offsets = [0, 0], sizes = [6, 6], strides = [1, 1]} : vector<6x24xf32> to vector<6x6xf32>
    %14 = vector.extract_strided_slice %2 {offsets = [0, 6], sizes = [6, 6], strides = [1, 1]} : vector<6x24xf32> to vector<6x6xf32>
    %15 = vector.extract_strided_slice %2 {offsets = [0, 12], sizes = [6, 6], strides = [1, 1]} : vector<6x24xf32> to vector<6x6xf32>
    %16 = vector.extract_strided_slice %2 {offsets = [0, 18], sizes = [6, 6], strides = [1, 1]} : vector<6x24xf32> to vector<6x6xf32>
    %17 = tpu.iota {dimensions = array<i32: 0>} : vector<6x6xi32>
    %18 = tpu.iota {dimensions = array<i32: 1>} : vector<6x6xi32>
    %19 = arith.cmpi eq, %17, %18 : vector<6x6xi32>
    %20 = arith.extui %19 : vector<6x6xi1> to vector<6x6xi32>
    %21 = arith.sitofp %20 : vector<6x6xi32> to vector<6x6xf32>
    %cst_11 = arith.constant 0.000000e+00 : f32
    %22 = vector.broadcast %cst_11 : f32 to vector<1x6xf32>
    %cst_12 = arith.constant 0.000000e+00 : f32
    %23 = vector.broadcast %cst_12 : f32 to vector<1x6xf32>
    %24 = vector.shape_cast %22 : vector<1x6xf32> to vector<1x6xf32>
    %25 = vector.broadcast %24 : vector<1x6xf32> to vector<6x6xf32>
    %26 = arith.mulf %25, %21 : vector<6x6xf32>
    %cst_13 = arith.constant dense<0.000000e+00> : vector<6xf32>
    %27 = vector.multi_reduction <add>, %26, %cst_13 [1] : vector<6x6xf32> to vector<6xf32>
    %28 = vector.shape_cast %27 : vector<6xf32> to vector<6x1xf32>
    %29 = vector.shape_cast %28 : vector<6x1xf32> to vector<6x1xf32>
    %30 = vector.broadcast %29 : vector<6x1xf32> to vector<6x6xf32>
    %31 = vector.extract_strided_slice %9 {offsets = [0, 0], sizes = [1, 6], strides = [1, 1]} : vector<5x6xf32> to vector<1x6xf32>
    %32 = arith.mulf %30, %13 : vector<6x6xf32>
    %cst_14 = arith.constant dense<0.000000e+00> : vector<6xf32>
    %33 = vector.multi_reduction <add>, %32, %cst_14 [0] : vector<6x6xf32> to vector<6xf32>
    %34 = vector.shape_cast %33 : vector<6xf32> to vector<1x6xf32>
    %35 = arith.addf %31, %34 : vector<1x6xf32>
    %36 = vector.extract_strided_slice %10 {offsets = [0, 0], sizes = [1, 6], strides = [1, 1]} : vector<5x6xf32> to vector<1x6xf32>
    %37 = arith.mulf %30, %14 : vector<6x6xf32>
    %cst_15 = arith.constant dense<0.000000e+00> : vector<6xf32>
    %38 = vector.multi_reduction <add>, %37, %cst_15 [0] : vector<6x6xf32> to vector<6xf32>
    %39 = vector.shape_cast %38 : vector<6xf32> to vector<1x6xf32>
    %40 = arith.addf %36, %39 : vector<1x6xf32>
    %41 = vector.extract_strided_slice %11 {offsets = [0, 0], sizes = [1, 6], strides = [1, 1]} : vector<5x6xf32> to vector<1x6xf32>
    %42 = arith.mulf %30, %15 : vector<6x6xf32>
    %cst_16 = arith.constant dense<0.000000e+00> : vector<6xf32>
    %43 = vector.multi_reduction <add>, %42, %cst_16 [0] : vector<6x6xf32> to vector<6xf32>
    %44 = vector.shape_cast %43 : vector<6xf32> to vector<1x6xf32>
    %45 = arith.addf %41, %44 : vector<1x6xf32>
    %46 = vector.extract_strided_slice %12 {offsets = [0, 0], sizes = [1, 6], strides = [1, 1]} : vector<5x6xf32> to vector<1x6xf32>
    %47 = arith.mulf %30, %16 : vector<6x6xf32>
    %cst_17 = arith.constant dense<0.000000e+00> : vector<6xf32>
    %48 = vector.multi_reduction <add>, %47, %cst_17 [0] : vector<6x6xf32> to vector<6xf32>
    %49 = vector.shape_cast %48 : vector<6xf32> to vector<1x6xf32>
    %50 = arith.addf %46, %49 : vector<1x6xf32>
    %51 = tpu.concatenate %35, %40, %50 in 0 : vector<1x6xf32>, vector<1x6xf32>, vector<1x6xf32> -> vector<3x6xf32>
    %52 = arith.negf %51 : vector<3x6xf32>
    %53 = math.exp %52 : vector<3x6xf32>
    %cst_18 = arith.constant 1.000000e+00 : f32
    %54 = vector.broadcast %cst_18 : f32 to vector<3x6xf32>
    %55 = arith.addf %54, %53 : vector<3x6xf32>
    %56 = arith.divf %54, %55 : vector<3x6xf32>
    %57 = vector.extract_strided_slice %56 {offsets = [0, 0], sizes = [1, 6], strides = [1, 1]} : vector<3x6xf32> to vector<1x6xf32>
    %58 = vector.extract_strided_slice %56 {offsets = [1, 0], sizes = [1, 6], strides = [1, 1]} : vector<3x6xf32> to vector<1x6xf32>
    %59 = vector.extract_strided_slice %56 {offsets = [2, 0], sizes = [1, 6], strides = [1, 1]} : vector<3x6xf32> to vector<1x6xf32>
    %60 = math.tanh %45 : vector<1x6xf32>
    %61 = arith.mulf %58, %23 : vector<1x6xf32>
    %62 = arith.mulf %57, %60 : vector<1x6xf32>
    %63 = arith.addf %61, %62 : vector<1x6xf32>
    %64 = math.tanh %63 : vector<1x6xf32>
    %65 = arith.mulf %59, %64 : vector<1x6xf32>
    %66 = vector.shape_cast %65 : vector<1x6xf32> to vector<1x6xf32>
    %67 = vector.broadcast %66 : vector<1x6xf32> to vector<6x6xf32>
    %68 = arith.mulf %67, %21 : vector<6x6xf32>
    %cst_19 = arith.constant dense<0.000000e+00> : vector<6xf32>
    %69 = vector.multi_reduction <add>, %68, %cst_19 [1] : vector<6x6xf32> to vector<6xf32>
    %70 = vector.shape_cast %69 : vector<6xf32> to vector<6x1xf32>
    %71 = vector.shape_cast %70 : vector<6x1xf32> to vector<6x1xf32>
    %72 = vector.broadcast %71 : vector<6x1xf32> to vector<6x6xf32>
    %73 = vector.extract_strided_slice %9 {offsets = [1, 0], sizes = [1, 6], strides = [1, 1]} : vector<5x6xf32> to vector<1x6xf32>
    %74 = arith.mulf %72, %13 : vector<6x6xf32>
    %cst_20 = arith.constant dense<0.000000e+00> : vector<6xf32>
    %75 = vector.multi_reduction <add>, %74, %cst_20 [0] : vector<6x6xf32> to vector<6xf32>
    %76 = vector.shape_cast %75 : vector<6xf32> to vector<1x6xf32>
    %77 = arith.addf %73, %76 : vector<1x6xf32>
    %78 = vector.extract_strided_slice %10 {offsets = [1, 0], sizes = [1, 6], strides = [1, 1]} : vector<5x6xf32> to vector<1x6xf32>
    %79 = arith.mulf %72, %14 : vector<6x6xf32>
    %cst_21 = arith.constant dense<0.000000e+00> : vector<6xf32>
    %80 = vector.multi_reduction <add>, %79, %cst_21 [0] : vector<6x6xf32> to vector<6xf32>
    %81 = vector.shape_cast %80 : vector<6xf32> to vector<1x6xf32>
    %82 = arith.addf %78, %81 : vector<1x6xf32>
    %83 = vector.extract_strided_slice %11 {offsets = [1, 0], sizes = [1, 6], strides = [1, 1]} : vector<5x6xf32> to vector<1x6xf32>
    %84 = arith.mulf %72, %15 : vector<6x6xf32>
    %cst_22 = arith.constant dense<0.000000e+00> : vector<6xf32>
    %85 = vector.multi_reduction <add>, %84, %cst_22 [0] : vector<6x6xf32> to vector<6xf32>
    %86 = vector.shape_cast %85 : vector<6xf32> to vector<1x6xf32>
    %87 = arith.addf %83, %86 : vector<1x6xf32>
    %88 = vector.extract_strided_slice %12 {offsets = [1, 0], sizes = [1, 6], strides = [1, 1]} : vector<5x6xf32> to vector<1x6xf32>
    %89 = arith.mulf %72, %16 : vector<6x6xf32>
    %cst_23 = arith.constant dense<0.000000e+00> : vector<6xf32>
    %90 = vector.multi_reduction <add>, %89, %cst_23 [0] : vector<6x6xf32> to vector<6xf32>
    %91 = vector.shape_cast %90 : vector<6xf32> to vector<1x6xf32>
    %92 = arith.addf %88, %91 : vector<1x6xf32>
    %93 = tpu.concatenate %77, %82, %92 in 0 : vector<1x6xf32>, vector<1x6xf32>, vector<1x6xf32> -> vector<3x6xf32>
    %94 = arith.negf %93 : vector<3x6xf32>
    %95 = math.exp %94 : vector<3x6xf32>
    %cst_24 = arith.constant 1.000000e+00 : f32
    %96 = vector.broadcast %cst_24 : f32 to vector<3x6xf32>
    %97 = arith.addf %96, %95 : vector<3x6xf32>
    %98 = arith.divf %96, %97 : vector<3x6xf32>
    %99 = vector.extract_strided_slice %98 {offsets = [0, 0], sizes = [1, 6], strides = [1, 1]} : vector<3x6xf32> to vector<1x6xf32>
    %100 = vector.extract_strided_slice %98 {offsets = [1, 0], sizes = [1, 6], strides = [1, 1]} : vector<3x6xf32> to vector<1x6xf32>
    %101 = vector.extract_strided_slice %98 {offsets = [2, 0], sizes = [1, 6], strides = [1, 1]} : vector<3x6xf32> to vector<1x6xf32>
    %102 = math.tanh %87 : vector<1x6xf32>
    %103 = arith.mulf %100, %63 : vector<1x6xf32>
    %104 = arith.mulf %99, %102 : vector<1x6xf32>
    %105 = arith.addf %103, %104 : vector<1x6xf32>
    %106 = math.tanh %105 : vector<1x6xf32>
    %107 = arith.mulf %101, %106 : vector<1x6xf32>
    %108 = vector.shape_cast %107 : vector<1x6xf32> to vector<1x6xf32>
    %109 = vector.broadcast %108 : vector<1x6xf32> to vector<6x6xf32>
    %110 = arith.mulf %109, %21 : vector<6x6xf32>
    %cst_25 = arith.constant dense<0.000000e+00> : vector<6xf32>
    %111 = vector.multi_reduction <add>, %110, %cst_25 [1] : vector<6x6xf32> to vector<6xf32>
    %112 = vector.shape_cast %111 : vector<6xf32> to vector<6x1xf32>
    %113 = vector.shape_cast %112 : vector<6x1xf32> to vector<6x1xf32>
    %114 = vector.broadcast %113 : vector<6x1xf32> to vector<6x6xf32>
    %115 = vector.extract_strided_slice %9 {offsets = [2, 0], sizes = [1, 6], strides = [1, 1]} : vector<5x6xf32> to vector<1x6xf32>
    %116 = arith.mulf %114, %13 : vector<6x6xf32>
    %cst_26 = arith.constant dense<0.000000e+00> : vector<6xf32>
    %117 = vector.multi_reduction <add>, %116, %cst_26 [0] : vector<6x6xf32> to vector<6xf32>
    %118 = vector.shape_cast %117 : vector<6xf32> to vector<1x6xf32>
    %119 = arith.addf %115, %118 : vector<1x6xf32>
    %120 = vector.extract_strided_slice %10 {offsets = [2, 0], sizes = [1, 6], strides = [1, 1]} : vector<5x6xf32> to vector<1x6xf32>
    %121 = arith.mulf %114, %14 : vector<6x6xf32>
    %cst_27 = arith.constant dense<0.000000e+00> : vector<6xf32>
    %122 = vector.multi_reduction <add>, %121, %cst_27 [0] : vector<6x6xf32> to vector<6xf32>
    %123 = vector.shape_cast %122 : vector<6xf32> to vector<1x6xf32>
    %124 = arith.addf %120, %123 : vector<1x6xf32>
    %125 = vector.extract_strided_slice %11 {offsets = [2, 0], sizes = [1, 6], strides = [1, 1]} : vector<5x6xf32> to vector<1x6xf32>
    %126 = arith.mulf %114, %15 : vector<6x6xf32>
    %cst_28 = arith.constant dense<0.000000e+00> : vector<6xf32>
    %127 = vector.multi_reduction <add>, %126, %cst_28 [0] : vector<6x6xf32> to vector<6xf32>
    %128 = vector.shape_cast %127 : vector<6xf32> to vector<1x6xf32>
    %129 = arith.addf %125, %128 : vector<1x6xf32>
    %130 = vector.extract_strided_slice %12 {offsets = [2, 0], sizes = [1, 6], strides = [1, 1]} : vector<5x6xf32> to vector<1x6xf32>
    %131 = arith.mulf %114, %16 : vector<6x6xf32>
    %cst_29 = arith.constant dense<0.000000e+00> : vector<6xf32>
    %132 = vector.multi_reduction <add>, %131, %cst_29 [0] : vector<6x6xf32> to vector<6xf32>
    %133 = vector.shape_cast %132 : vector<6xf32> to vector<1x6xf32>
    %134 = arith.addf %130, %133 : vector<1x6xf32>
    %135 = tpu.concatenate %119, %124, %134 in 0 : vector<1x6xf32>, vector<1x6xf32>, vector<1x6xf32> -> vector<3x6xf32>
    %136 = arith.negf %135 : vector<3x6xf32>
    %137 = math.exp %136 : vector<3x6xf32>
    %cst_30 = arith.constant 1.000000e+00 : f32
    %138 = vector.broadcast %cst_30 : f32 to vector<3x6xf32>
    %139 = arith.addf %138, %137 : vector<3x6xf32>
    %140 = arith.divf %138, %139 : vector<3x6xf32>
    %141 = vector.extract_strided_slice %140 {offsets = [0, 0], sizes = [1, 6], strides = [1, 1]} : vector<3x6xf32> to vector<1x6xf32>
    %142 = vector.extract_strided_slice %140 {offsets = [1, 0], sizes = [1, 6], strides = [1, 1]} : vector<3x6xf32> to vector<1x6xf32>
    %143 = vector.extract_strided_slice %140 {offsets = [2, 0], sizes = [1, 6], strides = [1, 1]} : vector<3x6xf32> to vector<1x6xf32>
    %144 = math.tanh %129 : vector<1x6xf32>
    %145 = arith.mulf %142, %105 : vector<1x6xf32>
    %146 = arith.mulf %141, %144 : vector<1x6xf32>
    %147 = arith.addf %145, %146 : vector<1x6xf32>
    %148 = math.tanh %147 : vector<1x6xf32>
    %149 = arith.mulf %143, %148 : vector<1x6xf32>
    %150 = vector.shape_cast %149 : vector<1x6xf32> to vector<1x6xf32>
    %151 = vector.broadcast %150 : vector<1x6xf32> to vector<6x6xf32>
    %152 = arith.mulf %151, %21 : vector<6x6xf32>
    %cst_31 = arith.constant dense<0.000000e+00> : vector<6xf32>
    %153 = vector.multi_reduction <add>, %152, %cst_31 [1] : vector<6x6xf32> to vector<6xf32>
    %154 = vector.shape_cast %153 : vector<6xf32> to vector<6x1xf32>
    %155 = vector.shape_cast %154 : vector<6x1xf32> to vector<6x1xf32>
    %156 = vector.broadcast %155 : vector<6x1xf32> to vector<6x6xf32>
    %157 = vector.extract_strided_slice %9 {offsets = [3, 0], sizes = [1, 6], strides = [1, 1]} : vector<5x6xf32> to vector<1x6xf32>
    %158 = arith.mulf %156, %13 : vector<6x6xf32>
    %cst_32 = arith.constant dense<0.000000e+00> : vector<6xf32>
    %159 = vector.multi_reduction <add>, %158, %cst_32 [0] : vector<6x6xf32> to vector<6xf32>
    %160 = vector.shape_cast %159 : vector<6xf32> to vector<1x6xf32>
    %161 = arith.addf %157, %160 : vector<1x6xf32>
    %162 = vector.extract_strided_slice %10 {offsets = [3, 0], sizes = [1, 6], strides = [1, 1]} : vector<5x6xf32> to vector<1x6xf32>
    %163 = arith.mulf %156, %14 : vector<6x6xf32>
    %cst_33 = arith.constant dense<0.000000e+00> : vector<6xf32>
    %164 = vector.multi_reduction <add>, %163, %cst_33 [0] : vector<6x6xf32> to vector<6xf32>
    %165 = vector.shape_cast %164 : vector<6xf32> to vector<1x6xf32>
    %166 = arith.addf %162, %165 : vector<1x6xf32>
    %167 = vector.extract_strided_slice %11 {offsets = [3, 0], sizes = [1, 6], strides = [1, 1]} : vector<5x6xf32> to vector<1x6xf32>
    %168 = arith.mulf %156, %15 : vector<6x6xf32>
    %cst_34 = arith.constant dense<0.000000e+00> : vector<6xf32>
    %169 = vector.multi_reduction <add>, %168, %cst_34 [0] : vector<6x6xf32> to vector<6xf32>
    %170 = vector.shape_cast %169 : vector<6xf32> to vector<1x6xf32>
    %171 = arith.addf %167, %170 : vector<1x6xf32>
    %172 = vector.extract_strided_slice %12 {offsets = [3, 0], sizes = [1, 6], strides = [1, 1]} : vector<5x6xf32> to vector<1x6xf32>
    %173 = arith.mulf %156, %16 : vector<6x6xf32>
    %cst_35 = arith.constant dense<0.000000e+00> : vector<6xf32>
    %174 = vector.multi_reduction <add>, %173, %cst_35 [0] : vector<6x6xf32> to vector<6xf32>
    %175 = vector.shape_cast %174 : vector<6xf32> to vector<1x6xf32>
    %176 = arith.addf %172, %175 : vector<1x6xf32>
    %177 = tpu.concatenate %161, %166, %176 in 0 : vector<1x6xf32>, vector<1x6xf32>, vector<1x6xf32> -> vector<3x6xf32>
    %178 = arith.negf %177 : vector<3x6xf32>
    %179 = math.exp %178 : vector<3x6xf32>
    %cst_36 = arith.constant 1.000000e+00 : f32
    %180 = vector.broadcast %cst_36 : f32 to vector<3x6xf32>
    %181 = arith.addf %180, %179 : vector<3x6xf32>
    %182 = arith.divf %180, %181 : vector<3x6xf32>
    %183 = vector.extract_strided_slice %182 {offsets = [0, 0], sizes = [1, 6], strides = [1, 1]} : vector<3x6xf32> to vector<1x6xf32>
    %184 = vector.extract_strided_slice %182 {offsets = [1, 0], sizes = [1, 6], strides = [1, 1]} : vector<3x6xf32> to vector<1x6xf32>
    %185 = vector.extract_strided_slice %182 {offsets = [2, 0], sizes = [1, 6], strides = [1, 1]} : vector<3x6xf32> to vector<1x6xf32>
    %186 = math.tanh %171 : vector<1x6xf32>
    %187 = arith.mulf %184, %147 : vector<1x6xf32>
    %188 = arith.mulf %183, %186 : vector<1x6xf32>
    %189 = arith.addf %187, %188 : vector<1x6xf32>
    %190 = math.tanh %189 : vector<1x6xf32>
    %191 = arith.mulf %185, %190 : vector<1x6xf32>
    %192 = vector.shape_cast %191 : vector<1x6xf32> to vector<1x6xf32>
    %193 = vector.broadcast %192 : vector<1x6xf32> to vector<6x6xf32>
    %194 = arith.mulf %193, %21 : vector<6x6xf32>
    %cst_37 = arith.constant dense<0.000000e+00> : vector<6xf32>
    %195 = vector.multi_reduction <add>, %194, %cst_37 [1] : vector<6x6xf32> to vector<6xf32>
    %196 = vector.shape_cast %195 : vector<6xf32> to vector<6x1xf32>
    %197 = vector.shape_cast %196 : vector<6x1xf32> to vector<6x1xf32>
    %198 = vector.broadcast %197 : vector<6x1xf32> to vector<6x6xf32>
    %199 = vector.extract_strided_slice %9 {offsets = [4, 0], sizes = [1, 6], strides = [1, 1]} : vector<5x6xf32> to vector<1x6xf32>
    %200 = arith.mulf %198, %13 : vector<6x6xf32>
    %cst_38 = arith.constant dense<0.000000e+00> : vector<6xf32>
    %201 = vector.multi_reduction <add>, %200, %cst_38 [0] : vector<6x6xf32> to vector<6xf32>
    %202 = vector.shape_cast %201 : vector<6xf32> to vector<1x6xf32>
    %203 = arith.addf %199, %202 : vector<1x6xf32>
    %204 = vector.extract_strided_slice %10 {offsets = [4, 0], sizes = [1, 6], strides = [1, 1]} : vector<5x6xf32> to vector<1x6xf32>
    %205 = arith.mulf %198, %14 : vector<6x6xf32>
    %cst_39 = arith.constant dense<0.000000e+00> : vector<6xf32>
    %206 = vector.multi_reduction <add>, %205, %cst_39 [0] : vector<6x6xf32> to vector<6xf32>
    %207 = vector.shape_cast %206 : vector<6xf32> to vector<1x6xf32>
    %208 = arith.addf %204, %207 : vector<1x6xf32>
    %209 = vector.extract_strided_slice %11 {offsets = [4, 0], sizes = [1, 6], strides = [1, 1]} : vector<5x6xf32> to vector<1x6xf32>
    %210 = arith.mulf %198, %15 : vector<6x6xf32>
    %cst_40 = arith.constant dense<0.000000e+00> : vector<6xf32>
    %211 = vector.multi_reduction <add>, %210, %cst_40 [0] : vector<6x6xf32> to vector<6xf32>
    %212 = vector.shape_cast %211 : vector<6xf32> to vector<1x6xf32>
    %213 = arith.addf %209, %212 : vector<1x6xf32>
    %214 = vector.extract_strided_slice %12 {offsets = [4, 0], sizes = [1, 6], strides = [1, 1]} : vector<5x6xf32> to vector<1x6xf32>
    %215 = arith.mulf %198, %16 : vector<6x6xf32>
    %cst_41 = arith.constant dense<0.000000e+00> : vector<6xf32>
    %216 = vector.multi_reduction <add>, %215, %cst_41 [0] : vector<6x6xf32> to vector<6xf32>
    %217 = vector.shape_cast %216 : vector<6xf32> to vector<1x6xf32>
    %218 = arith.addf %214, %217 : vector<1x6xf32>
    %219 = tpu.concatenate %203, %208, %218 in 0 : vector<1x6xf32>, vector<1x6xf32>, vector<1x6xf32> -> vector<3x6xf32>
    %220 = arith.negf %219 : vector<3x6xf32>
    %221 = math.exp %220 : vector<3x6xf32>
    %cst_42 = arith.constant 1.000000e+00 : f32
    %222 = vector.broadcast %cst_42 : f32 to vector<3x6xf32>
    %223 = arith.addf %222, %221 : vector<3x6xf32>
    %224 = arith.divf %222, %223 : vector<3x6xf32>
    %225 = vector.extract_strided_slice %224 {offsets = [0, 0], sizes = [1, 6], strides = [1, 1]} : vector<3x6xf32> to vector<1x6xf32>
    %226 = vector.extract_strided_slice %224 {offsets = [1, 0], sizes = [1, 6], strides = [1, 1]} : vector<3x6xf32> to vector<1x6xf32>
    %227 = vector.extract_strided_slice %224 {offsets = [2, 0], sizes = [1, 6], strides = [1, 1]} : vector<3x6xf32> to vector<1x6xf32>
    %228 = math.tanh %213 : vector<1x6xf32>
    %229 = arith.mulf %226, %189 : vector<1x6xf32>
    %230 = arith.mulf %225, %228 : vector<1x6xf32>
    %231 = arith.addf %229, %230 : vector<1x6xf32>
    %232 = math.tanh %231 : vector<1x6xf32>
    %233 = arith.mulf %227, %232 : vector<1x6xf32>
    %234 = tpu.concatenate %65, %107, %149, %191, %233 in 0 : vector<1x6xf32>, vector<1x6xf32>, vector<1x6xf32>, vector<1x6xf32>, vector<1x6xf32> -> vector<5x6xf32>
    %cst_43 = arith.constant dense<0.000000e+00> : vector<5x3xf32>
    %235 = tpu.matmul %234, %4, %cst_43 {dimension_numbers = #tpu.dot_dimension_numbers<[1], [0], [0], [1], [0, 0, 1, 1], [], []>} : vector<5x6xf32>, vector<6x3xf32>, vector<5x3xf32> -> vector<5x3xf32>
    %236 = vector.broadcast %5 : vector<1x3xf32> to vector<5x3xf32>
    %237 = arith.addf %235, %236 : vector<5x3xf32>
    %cst_44 = arith.constant dense<0xFF800000> : vector<5xf32>
    %238 = vector.multi_reduction <maximumf>, %237, %cst_44 [1] : vector<5x3xf32> to vector<5xf32>
    %239 = vector.shape_cast %238 : vector<5xf32> to vector<5x1xf32>
    %240 = vector.broadcast %239 : vector<5x1xf32> to vector<5x3xf32>
    %241 = arith.subf %237, %240 : vector<5x3xf32>
    %242 = math.exp %241 : vector<5x3xf32>
    %cst_45 = arith.constant dense<0.000000e+00> : vector<5xf32>
    %243 = vector.multi_reduction <add>, %242, %cst_45 [1] : vector<5x3xf32> to vector<5xf32>
    %244 = vector.shape_cast %243 : vector<5xf32> to vector<5x1xf32>
    %245 = math.log %244 : vector<5x1xf32>
    %246 = vector.broadcast %245 : vector<5x1xf32> to vector<5x3xf32>
    %247 = arith.subf %241, %246 : vector<5x3xf32>
    %c0_46 = arith.constant 0 : index
    %c0_47 = arith.constant 0 : index
    %248 = vector.load %arg6[%c0_46, %c0_47] : memref<5x3xf32, #tpu.memory_space<vmem>>, vector<5x3xf32>
    tpu.vector_store %arg6[%c0_46, %c0_47], %247 {strides = array<i32>} : memref<5x3xf32, #tpu.memory_space<vmem>>, vector<5x3xf32>,
    return
  }
}

</mosaic_0001>

<bundles_post_ra>
// kernel: tpu_custom_call.1
= control target key start
LH: loop header
LB: loop body
LE: loop exit
PB: predicated region body
PF: predicated region fallthrough
CT: control target
= control target key end

     0   :  { %11 = vsyncpa [#allocation3], 0  ;;  %s742_s21 = smov [#allocation2]   ;;  %s947_s0 = inlined_call_operand.vmem [shape: f32[5,6], index: 0, kind: input, shape index: {}]   ;;  %s948_s1 = inlined_call_operand.hbm [shape: f32[6,24], index: 1, kind: input, shape index: {}]   ;;  %s949_s2 = inlined_call_operand.vmem [shape: f32[6,24], index: 2, kind: input, shape index: {}]   ;;  %s950_s3 = inlined_call_operand.vmem [shape: f32[1,24], index: 3, kind: input, shape index: {}]   ;;  %s951_s4 = inlined_call_operand.vmem [shape: f32[6,3], index: 4, kind: input, shape index: {}]   ;;  %s952_s5 = inlined_call_operand.vmem [shape: f32[1,3], index: 5, kind: input, shape index: {}]   ;;  %s953_s6 = inlined_call_operand.vmem [shape: f32[5,3], index: 6, kind: output, shape index: {}]  }
   0x1   :  { %s20_s22 = sshll.u32 %s742_s21, 4  ;;  %s718_s25 = scalar_lea.hbm %s948_s1, 128  ;;  %s21_s22 = int_to_ptr.vmem [resolvable:$true] %s20_s22 }
   0x2   :  { %p719_p0 = scmp.ne.s32.totalorder %s948_s1, %s718_s25  ;;  %p722_p1 = scmp.lt.u32.totalorder %s718_s25, %s948_s1 }
   0x4   :  { %p724_p2 = pnand %p722_p1, %p719_p0 }
   0x6   :  { %727 = shalt.err (!%p724_p2)
}
   0x7   :  { %s728_s30 = scalar_lea.vmem %s21_s22, 128  ;;  %p733_p4 = scmp.lt.s32.totalorder %s21_s22, %s21_s22 }
   0x8   :  { %p729_p3 = scmp.ne.s32.totalorder %s21_s22, %s728_s30  ;;  %p734_p5 = scmp.lt.s32.totalorder %s728_s30, %s728_s30 }
   0xa   :  { %p735_p6 = por %p734_p5, %p733_p4 }
   0xc   :  { %p736_p7 = pnand %p735_p6, %p729_p3 }
   0xe   :  { %739 = shalt.err (!%p736_p7)
}
   0xf   :  { %23 = dma.hbm_to_vmem [thread:$0]  %s948_s1, 128, %s21_s22, [#allocation3]  }
  0x10   :  { %740 = dma.done.wait [#allocation3], 128  }
  0x11   :  { %741 = vsyncadd [#allocation3], 4294967168  ;;  %v743_v0 = vmov 0.0   ;;  %vm744_vm0 = vmmov 0   ;;  %v125_v1 = vlaneseq  ;;  %vm51_vm1 = vcmask 1045504   ;;  %s745_s12 = smov 110  }
  0x12   :  { %658 = vmatprep.subr.mxu0 %v743_v0  ;;  %660 = vmatprep.mubr.msk.f32.mxu0 %vm744_vm0, %v743_v0  ;;  %vm47_vm3 = vcmask 48128   ;;  %vm133_vm4 = vcmask 46080   ;;  %v36_v5 = vld [vmem:[#allocation2] sm:$0x3f]  ;;  %vm146_vm5 = vcmask 95280   ;;  %vm155_vm6 = vcmask 144480  }
  0x13   :  { %663 = vmatprep.subr.mxu1 %v743_v0  ;;  %665 = vmatprep.mubr.msk.f32.mxu1 %vm744_vm0, %v743_v0  ;;  %v795_v2 = vshrl.u32 %v125_v1, 7  ;;  %v128_v3 = vand.u32 127, %v125_v1  ;;  %v35_v6 = vld [vmem:[%s947_s0] sm:$0x1f]  ;;  %vm164_vm7 = vcmask 193680   ;;  %s747_s13 = smov 116  }
  0x14   :  { %659 = vmatpush3.msk.msra.mxu0 %vm51_vm1, %v36_v5  ;;  %v810_v10 = vld [vmem:[%s949_s2] sm:$0x3f]  ;;  %vm183_vm8 = vcmask 1040384   ;;  %vm185_vm9 = vcmask 1041408   ;;  %vm537_vm10 = vcmask 1042432   ;;  %vm539_vm11 = vcmask 1043456  }
  0x15   :  { %vm129_vm2 = vcmp.eq.s32.totalorder %v795_v2, %v128_v3  ;;  %661 = vmatmul.mubr.msk.f32.vlgmr.msra.gmra.mrb[0].mxu0 %vm47_vm3, %v35_v6  ;;  %v642_v30 = vld [vmem:[%s950_s3] ss:$0 sm:$0xff]  ;;  %s746_s3 = smov 122   ;;  %v835_v3 = vsub.s32 2, %v795_v2  ;;  %vm623_vm12 = vcmask 20480  }
  0x16   :  { %v798_v4 = vsel %vm129_vm2, 1.0, %v743_v0 }
  0x17   :  { %v132_v7 = vmul.f32 0.0, %v798_v4 }
  0x19   :  { %v134_v8 = vsel %vm133_vm4, %v132_v7, 0.0 }
  0x1a   :  { %135 = vadd.xlane.f32.xlu0 %v134_v8 }
  0xa7   :  { %v136_v9 = vpop.xlane.xlu0 %135 }
  0xa8   :  { %v137_v11 = vmul.f32 %v136_v9, %v810_v10 }
  0xaa   :  { %v147_v12 = vsel %vm146_vm5, %v137_v11, 0.0  ;;  %v156_v13 = vsel %vm155_vm6, %v137_v11, 0.0  ;;  %v165_v14 = vsel %vm164_vm7, %v137_v11, 0.0  ;;  %v138_v43 = vsel %vm133_vm4, %v137_v11, 0.0 }
  0xab   :  { %v148_v15 = vrot.slane %v147_v12, 4  ;;  %v157_v16 = vrot.slane %v156_v13, 4  ;;  %v166_v17 = vrot.slane %v165_v14, 4  ;;  %v139_v44 = vrot.slane %v138_v43, 4 }
  0xad   :  { %v149_v18 = vadd.f32 %v148_v15, %v147_v12  ;;  %v158_v19 = vadd.f32 %v157_v16, %v156_v13  ;;  %v167_v20 = vadd.f32 %v166_v17, %v165_v14  ;;  %v140_v45 = vadd.f32 %v139_v44, %v138_v43 }
  0xaf   :  { %v159_v21 = vrot.slane %v158_v19, 2  ;;  %v168_v22 = vrot.slane %v167_v20, 2  ;;  %v150_v23 = vrot.slane %v149_v18, 2  ;;  %v141_v46 = vrot.slane %v140_v45, 2 }
  0xb1   :  { %v160_v24 = vadd.f32 %v159_v21, %v158_v19  ;;  %v169_v25 = vadd.f32 %v168_v22, %v167_v20  ;;  %v151_v26 = vadd.f32 %v150_v23, %v149_v18  ;;  %v142_v47 = vadd.f32 %v141_v46, %v140_v45 }
  0xb3   :  { %v161_v27 = vrot.slane %v160_v24, 1  ;;  %v170_v28 = vrot.slane %v169_v25, 1  ;;  %v152_v29 = vrot.slane %v151_v26, 1  ;;  %v143_v48 = vrot.slane %v142_v47, 1 }
  0xb5   :  { %v162_v32 = vadd.f32 %v161_v27, %v160_v24  ;;  %v171_v35 = vadd.f32 %v170_v28, %v169_v25  ;;  %v153_v36 = vadd.f32 %v152_v29, %v151_v26  ;;  %v144_v49 = vadd.f32 %v143_v48, %v142_v47 }
  0xe8   :  { %v121_v31 = vpop.f32.mrb[0].mxu0 }
  0xe9   :  { %v819_v33 = vadd.f32 %v642_v30, %v121_v31  ;;  %v662_v34 = vpop.f32.mrb[1].mxu0 }
  0xeb   :  { %v172_v37 = vadd.f32 %v171_v35, %v819_v33  ;;  %v154_v38 = vadd.f32 %v153_v36, %v819_v33  ;;  %v163_v39 = vadd.f32 %v162_v32, %v819_v33  ;;  %v145_v50 = vadd.f32 %v144_v49, %v819_v33 }
  0xed   :  { %v179_v40 = vrot.slane %v172_v37, 6  ;;  %v174_v41 = vrot.slane %v154_v38, 7  ;;  %674 = vtanh.f32 %v163_v39 }
  0xef   :  { %180 = vrot.lane.b32.xlu1 %v179_v40, %s745_s12  ;;  %175 = vrot.lane.b32.xlu0 %v174_v41, %s746_s3 }
  0xf7   :  { %v675_v42 = vpop.eup %674 }
  0xf8   :  { %196 = vrot.lane.b32.xlu1 %v675_v42, %s747_s13 }
 0x161   :  { %v181_v51 = vpop.permute.xlu1 %180  ;;  %v176_v52 = vpop.permute.xlu0 %175 }
 0x162   :  { %v184_v53 = vsel %vm183_vm8, %v145_v50, %v176_v52 }
 0x163   :  { %v186_v54 = vsel %vm185_vm9, %v184_v53, %v181_v51 }
 0x164   :  { %v646_v55 = vmul.f32 -1.442695, %v186_v54 }
 0x166   :  { %676 = vpow2.f32 %v646_v55 }
 0x16a   :  { %v197_v59 = vpop.permute.xlu1 %196 }
 0x170   :  { %v677_v56 = vpop.eup %676 }
 0x171   :  { %v190_v57 = vadd.f32 1.0, %v677_v56 }
 0x173   :  { %678 = vrcp.f32 %v190_v57 }
 0x17d   :  { %v679_v58 = vpop.eup %678 }
 0x17e   :  { %v199_v60 = vmul.f32 %v679_v58, %v197_v59  ;;  %v194_v61 = vmul.f32 0.0, %v679_v58 }
 0x180   :  { %v201_v62 = vrot.slane %v199_v60, 7 }
 0x182   :  { %v831_v63 = vadd.f32 %v201_v62, %v194_v61 }
 0x184   :  { %680 = vtanh.f32 %v831_v63 }
 0x18e   :  { %v681_v0 = vpop.eup %680 }
 0x18f   :  { %v206_v1 = vrot.slane %v681_v0, 7 }
 0x191   :  { %v837_v5 = vmul.f32 %v679_v58, %v206_v1 }
 0x193   :  { %v212_v6 = vrot.slane %v837_v5, %v835_v3  ;;  %v524_v1 = vrot.slane %v837_v5, 2 }
 0x195   :  { %v213_v7 = vmul.f32 %v798_v4, %v212_v6 }
 0x197   :  { %v214_v8 = vsel %vm133_vm4, %v213_v7, 0.0 }
 0x198   :  { %215 = vadd.xlane.f32.xlu1 %v214_v8 }
 0x225   :  { %v216_v9 = vpop.xlane.xlu1 %215 }
 0x226   :  { %v217_v11 = vmul.f32 %v216_v9, %v810_v10 }
 0x228   :  { %v226_v12 = vsel %vm146_vm5, %v217_v11, 0.0  ;;  %v234_v13 = vsel %vm155_vm6, %v217_v11, 0.0  ;;  %v242_v2 = vsel %vm164_vm7, %v217_v11, 0.0  ;;  %v218_v39 = vsel %vm133_vm4, %v217_v11, 0.0 }
 0x229   :  { %v227_v14 = vrot.slane %v226_v12, 4  ;;  %v235_v15 = vrot.slane %v234_v13, 4  ;;  %v243_v16 = vrot.slane %v242_v2, 4  ;;  %v219_v40 = vrot.slane %v218_v39, 4 }
 0x22b   :  { %v228_v17 = vadd.f32 %v227_v14, %v226_v12  ;;  %v236_v18 = vadd.f32 %v235_v15, %v234_v13  ;;  %v244_v19 = vadd.f32 %v243_v16, %v242_v2  ;;  %v220_v41 = vadd.f32 %v219_v40, %v218_v39 }
 0x22d   :  { %v237_v20 = vrot.slane %v236_v18, 2  ;;  %v229_v21 = vrot.slane %v228_v17, 2  ;;  %v245_v22 = vrot.slane %v244_v19, 2  ;;  %v221_v42 = vrot.slane %v220_v41, 2 }
 0x22f   :  { %v230_v23 = vadd.f32 %v229_v21, %v228_v17  ;;  %v246_v24 = vadd.f32 %v245_v22, %v244_v19  ;;  %v238_v25 = vadd.f32 %v237_v20, %v236_v18  ;;  %v222_v43 = vadd.f32 %v221_v42, %v220_v41 }
 0x231   :  { %v231_v26 = vrot.slane %v230_v23, 1  ;;  %v247_v27 = vrot.slane %v246_v24, 1  ;;  %v239_v28 = vrot.slane %v238_v25, 1  ;;  %v223_v44 = vrot.slane %v222_v43, 1 }
 0x233   :  { %v232_v29 = vadd.f32 %v231_v26, %v230_v23  ;;  %v248_v30 = vadd.f32 %v247_v27, %v246_v24  ;;  %v240_v31 = vadd.f32 %v239_v28, %v238_v25  ;;  %v224_v45 = vadd.f32 %v223_v44, %v222_v43 }
 0x235   :  { %v233_v32 = vadd.f32 %v232_v29, %v819_v33  ;;  %v249_v34 = vadd.f32 %v248_v30, %v819_v33  ;;  %v241_v35 = vadd.f32 %v240_v31, %v819_v33  ;;  %v225_v46 = vadd.f32 %v224_v45, %v819_v33 }
 0x237   :  { %254 = vrot.lane.b32.xlu0 %v233_v32, %s746_s3  ;;  %682 = vtanh.f32 %v241_v35  ;;  %v258_v36 = vrot.slane %v249_v34, 7  ;;  %v251_v48 = vrot.slane %v225_v46, 1 }
 0x23b   :  { %259 = vrot.lane.b32.xlu0 %v258_v36, %s745_s12 }
 0x241   :  { %v683_v37 = vpop.eup %682 }
 0x242   :  { %v273_v38 = vrot.slane %v683_v37, 1 }
 0x244   :  { %274 = vrot.lane.b32.xlu0 %v273_v38, %s747_s13 }
 0x2a9   :  { %v255_v47 = vpop.permute.xlu0 %254 }
 0x2aa   :  { %v262_v49 = vsel %vm183_vm8, %v251_v48, %v255_v47 }
 0x2ad   :  { %v260_v50 = vpop.permute.xlu0 %259 }
 0x2ae   :  { %v263_v51 = vsel %vm185_vm9, %v262_v49, %v260_v50 }
 0x2af   :  { %v647_v52 = vmul.f32 -1.442695, %v263_v51 }
 0x2b1   :  { %684 = vpow2.f32 %v647_v52 }
 0x2b6   :  { %v275_v56 = vpop.permute.xlu0 %274 }
 0x2bb   :  { %v685_v53 = vpop.eup %684 }
 0x2bc   :  { %v267_v54 = vadd.f32 1.0, %v685_v53 }
 0x2be   :  { %686 = vrcp.f32 %v267_v54 }
 0x2c8   :  { %v687_v55 = vpop.eup %686 }
 0x2c9   :  { %v277_v57 = vmul.f32 %v687_v55, %v275_v56  ;;  %v271_v58 = vmul.f32 %v687_v55, %v831_v63 }
 0x2cb   :  { %v279_v59 = vrot.slane %v277_v57, 7 }
 0x2cd   :  { %v858_v60 = vadd.f32 %v279_v59, %v271_v58 }
 0x2cf   :  { %688 = vtanh.f32 %v858_v60 }
 0x2d9   :  { %v689_v61 = vpop.eup %688 }
 0x2da   :  { %v284_v62 = vrot.slane %v689_v61, 7 }
 0x2dc   :  { %v286_v0 = vmul.f32 %v687_v55, %v284_v62 }
 0x2de   :  { %v290_v6 = vrot.slane %v286_v0, %v835_v3  ;;  %v527_v7 = vrot.slane %v286_v0, 1 }
 0x2e0   :  { %v291_v8 = vmul.f32 %v798_v4, %v290_v6  ;;  %v865_v9 = vsel %vm183_vm8, %v524_v1, %v527_v7 }
 0x2e2   :  { %v292_v63 = vsel %vm133_vm4, %v291_v8, 0.0 }
 0x2e3   :  { %293 = vadd.xlane.f32.xlu0 %v292_v63 }
 0x370   :  { %v294_v11 = vpop.xlane.xlu0 %293 }
 0x371   :  { %v295_v12 = vmul.f32 %v294_v11, %v810_v10 }
 0x373   :  { %v304_v13 = vsel %vm146_vm5, %v295_v12, 0.0  ;;  %v312_v2 = vsel %vm155_vm6, %v295_v12, 0.0  ;;  %v320_v5 = vsel %vm164_vm7, %v295_v12, 0.0  ;;  %v296_v39 = vsel %vm133_vm4, %v295_v12, 0.0 }
 0x374   :  { %v305_v14 = vrot.slane %v304_v13, 4  ;;  %v313_v15 = vrot.slane %v312_v2, 4  ;;  %v321_v16 = vrot.slane %v320_v5, 4  ;;  %v297_v40 = vrot.slane %v296_v39, 4 }
 0x376   :  { %v306_v17 = vadd.f32 %v305_v14, %v304_v13  ;;  %v314_v18 = vadd.f32 %v313_v15, %v312_v2  ;;  %v322_v19 = vadd.f32 %v321_v16, %v320_v5  ;;  %v298_v41 = vadd.f32 %v297_v40, %v296_v39 }
 0x378   :  { %v315_v20 = vrot.slane %v314_v18, 2  ;;  %v307_v21 = vrot.slane %v306_v17, 2  ;;  %v323_v22 = vrot.slane %v322_v19, 2  ;;  %v299_v42 = vrot.slane %v298_v41, 2 }
 0x37a   :  { %v308_v23 = vadd.f32 %v307_v21, %v306_v17  ;;  %v324_v24 = vadd.f32 %v323_v22, %v322_v19  ;;  %v316_v25 = vadd.f32 %v315_v20, %v314_v18  ;;  %v300_v43 = vadd.f32 %v299_v42, %v298_v41 }
 0x37c   :  { %v309_v26 = vrot.slane %v308_v23, 1  ;;  %v317_v27 = vrot.slane %v316_v25, 1  ;;  %v325_v29 = vrot.slane %v324_v24, 1  ;;  %v301_v44 = vrot.slane %v300_v43, 1 }
 0x37e   :  { %v310_v28 = vadd.f32 %v309_v26, %v308_v23  ;;  %v318_v30 = vadd.f32 %v317_v27, %v316_v25  ;;  %v326_v35 = vadd.f32 %v325_v29, %v324_v24  ;;  %v302_v45 = vadd.f32 %v301_v44, %v300_v43 }
 0x380   :  { %v311_v31 = vadd.f32 %v310_v28, %v819_v33  ;;  %v319_v32 = vadd.f32 %v318_v30, %v819_v33  ;;  %v327_v36 = vadd.f32 %v326_v35, %v819_v33  ;;  %v303_v46 = vadd.f32 %v302_v45, %v819_v33 }
 0x382   :  { %v332_v34 = vrot.slane %v311_v31, 1  ;;  %690 = vtanh.f32 %v319_v32  ;;  %v329_v48 = vrot.slane %v303_v46, 2 }
 0x384   :  { %333 = vrot.lane.b32.xlu1 %v332_v34, %s746_s3 }
 0x388   :  { %337 = vrot.lane.b32.xlu1 %v327_v36, %s745_s12 }
 0x38c   :  { %v691_v37 = vpop.eup %690 }
 0x38d   :  { %v351_v38 = vrot.slane %v691_v37, 2 }
 0x38f   :  { %352 = vrot.lane.b32.xlu1 %v351_v38, %s747_s13 }
 0x3f6   :  { %v334_v47 = vpop.permute.xlu1 %333 }
 0x3f7   :  { %v340_v49 = vsel %vm183_vm8, %v329_v48, %v334_v47 }
 0x3fa   :  { %v338_v50 = vpop.permute.xlu1 %337 }
 0x3fb   :  { %v341_v51 = vsel %vm185_vm9, %v340_v49, %v338_v50 }
 0x3fc   :  { %v648_v52 = vmul.f32 -1.442695, %v341_v51 }
 0x3fe   :  { %692 = vpow2.f32 %v648_v52 }
 0x401   :  { %v353_v56 = vpop.permute.xlu1 %352 }
 0x408   :  { %v693_v53 = vpop.eup %692 }
 0x409   :  { %v345_v54 = vadd.f32 1.0, %v693_v53 }
 0x40b   :  { %694 = vrcp.f32 %v345_v54 }
 0x415   :  { %v695_v55 = vpop.eup %694 }
 0x416   :  { %v355_v57 = vmul.f32 %v695_v55, %v353_v56  ;;  %v349_v58 = vmul.f32 %v695_v55, %v858_v60 }
 0x418   :  { %v357_v59 = vrot.slane %v355_v57, 7 }
 0x41a   :  { %v883_v61 = vadd.f32 %v357_v59, %v349_v58 }
 0x41c   :  { %696 = vtanh.f32 %v883_v61 }
 0x426   :  { %v697_v62 = vpop.eup %696 }
 0x427   :  { %v362_v0 = vrot.slane %v697_v62, 7 }
 0x429   :  { %v364_v1 = vmul.f32 %v695_v55, %v362_v0 }
 0x42b   :  { %v368_v6 = vrot.slane %v364_v1, %v835_v3  ;;  %v889_v7 = vsel %vm185_vm9, %v865_v9, %v364_v1 }
 0x42d   :  { %v369_v8 = vmul.f32 %v798_v4, %v368_v6 }
 0x42f   :  { %v370_v63 = vsel %vm133_vm4, %v369_v8, 0.0 }
 0x430   :  { %371 = vadd.xlane.f32.xlu0 %v370_v63 }
 0x4bd   :  { %v372_v60 = vpop.xlane.xlu0 %371 }
 0x4be   :  { %v373_v11 = vmul.f32 %v372_v60, %v810_v10 }
 0x4c0   :  { %v382_v12 = vsel %vm146_vm5, %v373_v11, 0.0  ;;  %v390_v13 = vsel %vm155_vm6, %v373_v11, 0.0  ;;  %v398_v2 = vsel %vm164_vm7, %v373_v11, 0.0  ;;  %v374_v38 = vsel %vm133_vm4, %v373_v11, 0.0 }
 0x4c1   :  { %v383_v5 = vrot.slane %v382_v12, 4  ;;  %v391_v14 = vrot.slane %v390_v13, 4  ;;  %v399_v15 = vrot.slane %v398_v2, 4  ;;  %v375_v39 = vrot.slane %v374_v38, 4 }
 0x4c3   :  { %v384_v16 = vadd.f32 %v383_v5, %v382_v12  ;;  %v392_v9 = vadd.f32 %v391_v14, %v390_v13  ;;  %v400_v17 = vadd.f32 %v399_v15, %v398_v2  ;;  %v376_v40 = vadd.f32 %v375_v39, %v374_v38 }
 0x4c5   :  { %v393_v18 = vrot.slane %v392_v9, 2  ;;  %v401_v19 = vrot.slane %v400_v17, 2  ;;  %v385_v20 = vrot.slane %v384_v16, 2  ;;  %v377_v41 = vrot.slane %v376_v40, 2 }
 0x4c7   :  { %v402_v21 = vadd.f32 %v401_v19, %v400_v17  ;;  %v386_v22 = vadd.f32 %v385_v20, %v384_v16  ;;  %v394_v23 = vadd.f32 %v393_v18, %v392_v9  ;;  %v378_v42 = vadd.f32 %v377_v41, %v376_v40 }
 0x4c9   :  { %v403_v24 = vrot.slane %v402_v21, 1  ;;  %v387_v25 = vrot.slane %v386_v22, 1  ;;  %v395_v26 = vrot.slane %v394_v23, 1  ;;  %v379_v43 = vrot.slane %v378_v42, 1 }
 0x4cb   :  { %v404_v27 = vadd.f32 %v403_v24, %v402_v21  ;;  %v388_v28 = vadd.f32 %v387_v25, %v386_v22  ;;  %v396_v29 = vadd.f32 %v395_v26, %v394_v23  ;;  %v380_v44 = vadd.f32 %v379_v43, %v378_v42 }
 0x4cd   :  { %v405_v30 = vadd.f32 %v404_v27, %v819_v33  ;;  %v389_v31 = vadd.f32 %v388_v28, %v819_v33  ;;  %v397_v32 = vadd.f32 %v396_v29, %v819_v33  ;;  %v381_v45 = vadd.f32 %v380_v44, %v819_v33 }
 0x4cf   :  { %v415_v34 = vrot.slane %v405_v30, 1  ;;  %v410_v35 = vrot.slane %v389_v31, 2  ;;  %698 = vtanh.f32 %v397_v32  ;;  %v407_v46 = vrot.slane %v381_v45, 3 }
 0x4d1   :  { %416 = vrot.lane.b32.xlu0 %v415_v34, %s745_s12  ;;  %411 = vrot.lane.b32.xlu1 %v410_v35, %s746_s3  ;;  %v39_v35 = vld [vmem:[%s951_s4] sm:$0x3f] }
 0x4d2   :  { %664 = vmatpush3.msk.msra.mxu1 %vm51_vm1, %v39_v35 }
 0x4d9   :  { %v699_v36 = vpop.eup %698 }
 0x4da   :  { %v430_v37 = vrot.slane %v699_v36, 3 }
 0x4dc   :  { %431 = vrot.lane.b32.xlu1 %v430_v37, %s747_s13 }
 0x543   :  { %v417_v47 = vpop.permute.xlu0 %416  ;;  %v412_v48 = vpop.permute.xlu1 %411 }
 0x544   :  { %v419_v49 = vsel %vm183_vm8, %v407_v46, %v412_v48 }
 0x545   :  { %v420_v50 = vsel %vm185_vm9, %v419_v49, %v417_v47 }
 0x546   :  { %v649_v51 = vmul.f32 -1.442695, %v420_v50 }
 0x548   :  { %700 = vpow2.f32 %v649_v51 }
 0x54e   :  { %v432_v55 = vpop.permute.xlu1 %431 }
 0x552   :  { %v701_v52 = vpop.eup %700 }
 0x553   :  { %v424_v53 = vadd.f32 1.0, %v701_v52 }
 0x555   :  { %702 = vrcp.f32 %v424_v53 }
 0x55f   :  { %v703_v54 = vpop.eup %702 }
 0x560   :  { %v434_v56 = vmul.f32 %v703_v54, %v432_v55  ;;  %v428_v57 = vmul.f32 %v703_v54, %v883_v61 }
 0x562   :  { %v436_v58 = vrot.slane %v434_v56, 7 }
 0x564   :  { %v908_v59 = vadd.f32 %v436_v58, %v428_v57 }
 0x566   :  { %704 = vtanh.f32 %v908_v59 }
 0x570   :  { %v705_v62 = vpop.eup %704 }
 0x571   :  { %v441_v0 = vrot.slane %v705_v62, 7 }
 0x573   :  { %v443_v1 = vmul.f32 %v703_v54, %v441_v0 }
 0x575   :  { %v447_v6 = vrot.slane %v443_v1, %v835_v3  ;;  %v530_v8 = vrot.slane %v443_v1, 7 }
 0x577   :  { %v448_v63 = vmul.f32 %v798_v4, %v447_v6  ;;  %v914_v60 = vsel %vm537_vm10, %v889_v7, %v530_v8  ;;  %v651_v6 = vld [vmem:[%s952_s5] ss:$0 sm:$0xff] }
 0x579   :  { %v449_v11 = vsel %vm133_vm4, %v448_v63, 0.0 }
 0x57a   :  { %450 = vadd.xlane.f32.xlu1 %v449_v11 }
 0x607   :  { %v451_v61 = vpop.xlane.xlu1 %450 }
 0x608   :  { %v452_v12 = vmul.f32 %v451_v61, %v810_v10 }
 0x60a   :  { %v461_v13 = vsel %vm146_vm5, %v452_v12, 0.0  ;;  %v469_v2 = vsel %vm155_vm6, %v452_v12, 0.0  ;;  %v477_v5 = vsel %vm164_vm7, %v452_v12, 0.0  ;;  %v453_v36 = vsel %vm133_vm4, %v452_v12, 0.0 }
 0x60b   :  { %v462_v14 = vrot.slane %v461_v13, 4  ;;  %v470_v3 = vrot.slane %v469_v2, 4  ;;  %v478_v15 = vrot.slane %v477_v5, 4  ;;  %v454_v37 = vrot.slane %v453_v36, 4 }
 0x60d   :  { %v463_v16 = vadd.f32 %v462_v14, %v461_v13  ;;  %v471_v4 = vadd.f32 %v470_v3, %v469_v2  ;;  %v479_v9 = vadd.f32 %v478_v15, %v477_v5  ;;  %v455_v38 = vadd.f32 %v454_v37, %v453_v36 }
 0x60f   :  { %v472_v7 = vrot.slane %v471_v4, 2  ;;  %v464_v17 = vrot.slane %v463_v16, 2  ;;  %v480_v18 = vrot.slane %v479_v9, 2  ;;  %v456_v39 = vrot.slane %v455_v38, 2 }
 0x611   :  { %v465_v19 = vadd.f32 %v464_v17, %v463_v16  ;;  %v481_v20 = vadd.f32 %v480_v18, %v479_v9  ;;  %v473_v21 = vadd.f32 %v472_v7, %v471_v4  ;;  %v457_v40 = vadd.f32 %v456_v39, %v455_v38 }
 0x613   :  { %v466_v22 = vrot.slane %v465_v19, 1  ;;  %v482_v10 = vrot.slane %v481_v20, 1  ;;  %v474_v23 = vrot.slane %v473_v21, 1  ;;  %v458_v41 = vrot.slane %v457_v40, 1 }
 0x615   :  { %v467_v24 = vadd.f32 %v466_v22, %v465_v19  ;;  %v483_v25 = vadd.f32 %v482_v10, %v481_v20  ;;  %v475_v26 = vadd.f32 %v474_v23, %v473_v21  ;;  %v459_v42 = vadd.f32 %v458_v41, %v457_v40 }
 0x617   :  { %v468_v27 = vadd.f32 %v467_v24, %v819_v33  ;;  %v476_v28 = vadd.f32 %v475_v26, %v819_v33  ;;  %v484_v30 = vadd.f32 %v483_v25, %v819_v33  ;;  %v460_v43 = vadd.f32 %v459_v42, %v819_v33 }
 0x619   :  { %v489_v29 = vrot.slane %v468_v27, 3  ;;  %706 = vtanh.f32 %v476_v28  ;;  %v494_v31 = vrot.slane %v484_v30, 2  ;;  %v486_v45 = vrot.slane %v460_v43, 4 }
 0x61b   :  { %490 = vrot.lane.b32.xlu0 %v489_v29, %s746_s3 }
 0x61f   :  { %495 = vrot.lane.b32.xlu0 %v494_v31, %s745_s12 }
 0x623   :  { %v707_v32 = vpop.eup %706 }
 0x624   :  { %v509_v34 = vrot.slane %v707_v32, 4 }
 0x626   :  { %510 = vrot.lane.b32.xlu0 %v509_v34, %s747_s13 }
 0x68d   :  { %v491_v44 = vpop.permute.xlu0 %490 }
 0x68e   :  { %v498_v46 = vsel %vm183_vm8, %v486_v45, %v491_v44 }
 0x691   :  { %v496_v47 = vpop.permute.xlu0 %495 }
 0x692   :  { %v499_v48 = vsel %vm185_vm9, %v498_v46, %v496_v47 }
 0x693   :  { %v650_v49 = vmul.f32 -1.442695, %v499_v48 }
 0x695   :  { %708 = vpow2.f32 %v650_v49 }
 0x698   :  { %v511_v53 = vpop.permute.xlu0 %510 }
 0x69f   :  { %v709_v50 = vpop.eup %708 }
 0x6a0   :  { %v503_v51 = vadd.f32 1.0, %v709_v50 }
 0x6a2   :  { %710 = vrcp.f32 %v503_v51 }
 0x6ac   :  { %v711_v52 = vpop.eup %710 }
 0x6ad   :  { %v513_v54 = vmul.f32 %v711_v52, %v511_v53  ;;  %v507_v55 = vmul.f32 %v711_v52, %v908_v59 }
 0x6af   :  { %v515_v56 = vrot.slane %v513_v54, 7 }
 0x6b1   :  { %v517_v57 = vadd.f32 %v515_v56, %v507_v55 }
 0x6b3   :  { %712 = vtanh.f32 %v517_v57 }
 0x6bd   :  { %v713_v33 = vpop.eup %712 }
 0x6be   :  { %v520_v58 = vrot.slane %v713_v33, 7 }
 0x6c0   :  { %v522_v62 = vmul.f32 %v711_v52, %v520_v58 }
 0x6c2   :  { %v533_v0 = vrot.slane %v522_v62, 6 }
 0x6c4   :  { %v540_v1 = vsel %vm539_vm11, %v914_v60, %v533_v0 }
 0x6c5   :  { %666 = vmatmul.mubr.msk.f32.vlgmr.msra.gmra.mrb[0].mxu1 %vm47_vm3, %v540_v1 }
 0x798   :  { %v619_v8 = vpop.f32.mrb[0].mxu1 }
 0x799   :  { %v620_v63 = vadd.f32 %v651_v6, %v619_v8  ;;  %v667_v59 = vpop.f32.mrb[1].mxu1 }
 0x79b   :  { %v624_v11 = vsel %vm623_vm12, %v620_v63, -inf }
 0x79c   :  { %625 = vmax.xlane.f32.xlu0 %v624_v11 }
 0x829   :  { %v626_v61 = vpop.xlane.xlu0 %625 }
 0x82a   :  { %v627_v12 = vsub.f32 %v620_v63, %v626_v61 }
 0x82c   :  { %v628_v13 = vmul.f32 1.442695, %v627_v12 }
 0x82e   :  { %714 = vpow2.f32 %v628_v13 }
 0x838   :  { %v715_v2 = vpop.eup %714 }
 0x839   :  { %v630_v60 = vsel %vm623_vm12, %v715_v2, 0.0 }
 0x83a   :  { %631 = vadd.xlane.f32.xlu1 %v630_v60 }
 0x8c7   :  { %v632_v5 = vpop.xlane.xlu1 %631 }
 0x8c8   :  { %716 = vlog2.f32 %v632_v5 }
 0x8d2   :  { %v717_v14 = vpop.eup %716 }
 0x8d3   :  { %v634_v3 = vmul.f32 0.6931472, %v717_v14 }
 0x8d5   :  { %v635_v15 = vsub.f32 %v627_v12, %v634_v3 }
 0x8d7   :  { %636 = vst.msk [vmem:[%s953_s6] sm:$0x1f] %vm623_vm12, %v635_v15 }
 0x8d8   :  { %641 = vsyncpa [#allocation3], 1 }

</bundles_post_ra>
